<compile_context>
chip_gen: v6e
topology: v6e:2x2x1
jax: 0.10.0
libtpu: 0.0.40
codegen_flags: <defaults>
</compile_context>

<pallas_src>
import jax
import jax.numpy as jnp
from jax.experimental import pallas as pl
from jax.experimental.pallas import tpu as pltpu


def _round_up(a, b):
    return ((a + b - 1) // b) * b


# -----------------------------------------------------------------------------
# Kernel
# -----------------------------------------------------------------------------
def pwffn_kernel(x_ref, w1_ref, b1_ref, w2_ref, b2_ref, o_ref, acc_ref):
    # x_ref:  (TM, Dp)      row tile of activations
    # w1_ref: (Dp, TF)      column slab of W1 for this d_ff tile
    # b1_ref: (1, TF)       matching slice of b1
    # w2_ref: (TF, Dp)      row slab of W2 for this d_ff tile
    # b2_ref: (1, Dp)       full b2 (folded into the accumulator init)
    # o_ref:  (TM, Dp)      output tile (resident across the d_ff axis)
    # acc_ref:(TM, Dp) f32  accumulator scratch
    t = pl.program_id(1)

    @pl.when(t == 0)
    def _():
        # Seed the accumulator with b2: the bias is added exactly once and we skip
        # both the zero-fill store and a separate bias add at finalize.
        acc_ref[...] = jnp.broadcast_to(
            b2_ref[...].astype(jnp.float32), acc_ref.shape)

    # First matmul + bias + ReLU for this d_ff slab (MXU, f32 accumulation).
    h = jnp.dot(x_ref[...], w1_ref[...], preferred_element_type=jnp.float32)
    h = jnp.maximum(h + b1_ref[...].astype(jnp.float32), 0.0)
    # TODO(synk): nn.Dropout is identity in eval mode; training-mode dropout (PRNG mask) not emitted.

    # Second matmul: accumulate this slab's contribution to the output.
    acc_ref[...] += jnp.dot(h.astype(w2_ref.dtype), w2_ref[...],
                            preferred_element_type=jnp.float32)

    @pl.when(t == pl.num_programs(1) - 1)
    def _():
        o_ref[...] = acc_ref[...].astype(o_ref.dtype)


# -----------------------------------------------------------------------------
# Tile selection / parameter preparation (hoisted out of the per-call path)
# -----------------------------------------------------------------------------
_VMEM_BUDGET = 44 << 20  # fits v7x's 64 MiB/TC with headroom; well under v5e/v6e's 128 MiB


def _vmem_estimate(TM, TF, Dp, w_bytes, out_bytes):
    # Double-buffered BlockSpec inputs/outputs + the f32 accumulator scratch.
    dbl = 2 * ((TM * Dp + Dp * TF + TF * Dp) * w_bytes     # x, W1, W2 tiles
               + 8 * (TF + Dp) * w_bytes                   # b1, b2 (sublane-padded)
               + TM * Dp * out_bytes)                      # output tile
    return dbl + TM * Dp * 4                               # f32 accumulator


def _choose_feature_tiles(d_model, d_ff, w_bytes, out_bytes, tm, tf):
    """Pick Dp, Fp, TF (row-count independent; assumes the largest row tile tm)."""
    Dp = _round_up(d_model, 128)
    Fp0 = _round_up(d_ff, 128)

    # Preferred: keep the full W1/W2 resident (single d_ff step; weights DMA'd once
    # and reused across every row tile -> weight HBM traffic drops to 2*Dp*Fp bytes).
    if _vmem_estimate(tm, Fp0, Dp, w_bytes, out_bytes) <= _VMEM_BUDGET:
        return Dp, Fp0, Fp0

    # Fallback: tile d_ff. Pad Fp UP to a multiple of TF (never shrink TF for awkward
    # d_ff); only halve TF if the budget still doesn't fit.
    TF = min(tf, Fp0)
    while TF > 128 and _vmem_estimate(tm, TF, Dp, w_bytes, out_bytes) > _VMEM_BUDGET:
        TF = max(128, ((TF // 2) // 128) * 128)
    Fp = _round_up(d_ff, TF)
    return Dp, Fp, TF


def pwffn_prepare(w1, b1, w2, b2, *, compute_dtype=None, tm=512, tf=512):
    """Pad (and optionally cast) the parameters ONCE, outside the per-call path."""
    d_model, d_ff = w1.shape
    cdt = jnp.dtype(compute_dtype if compute_dtype is not None else w1.dtype)
    w_bytes = cdt.itemsize
    Dp, Fp, TF = _choose_feature_tiles(d_model, d_ff, w_bytes, 4, tm, tf)

    # Zero padding is mathematically inert (padded rows/cols contribute nothing).
    w1p = jnp.pad(w1.astype(cdt), ((0, Dp - d_model), (0, Fp - d_ff)))
    b1p = jnp.pad(jnp.reshape(b1, (1, d_ff)).astype(cdt), ((0, 0), (0, Fp - d_ff)))
    w2p = jnp.pad(w2.astype(cdt), ((0, Fp - d_ff), (0, Dp - d_model)))
    b2p = jnp.pad(jnp.reshape(b2, (1, d_model)).astype(cdt), ((0, 0), (0, Dp - d_model)))

    cfg = dict(d_model=d_model, d_ff=d_ff, Dp=Dp, Fp=Fp, TF=TF, tm=tm,
               compute_dtype=cdt)
    return (w1p, b1p, w2p, b2p), cfg


# -----------------------------------------------------------------------------
# Forward pass
# -----------------------------------------------------------------------------
def pwffn(x, prepared, cfg):
    """x: (B, S, d_model) -> (B, S, d_model)."""
    B, S, d_model = x.shape
    assert d_model == cfg["d_model"]
    w1p, b1p, w2p, b2p = prepared
    Dp, Fp, TF = cfg["Dp"], cfg["Fp"], cfg["TF"]
    cdt = cfg["compute_dtype"]
    out_dtype = x.dtype
    out_bytes = jnp.dtype(out_dtype).itemsize
    w_bytes = cdt.itemsize

    rows = B * S
    TM = min(cfg["tm"], _round_up(rows, 8))
    TM = max(8, (TM // 8) * 8)
    rows_p = _round_up(rows, TM)

    x2d = x.reshape(rows, d_model).astype(cdt)
    if rows_p != rows or Dp != d_model:
        x2d = jnp.pad(x2d, ((0, rows_p - rows), (0, Dp - d_model)))

    grid = (rows_p // TM, Fp // TF)

    cost = pl.CostEstimate(
        flops=4 * rows_p * Dp * Fp,
        transcendentals=0,
        bytes_accessed=int(rows_p * Dp * w_bytes        # x
                           + 2 * Dp * Fp * w_bytes      # W1 + W2 (resident case)
                           + rows_p * Dp * out_bytes))  # output

    vmem_need = _vmem_estimate(TM, TF, Dp, w_bytes, out_bytes)
    vmem_limit = int(min(56 << 20, max(32 << 20, int(vmem_need * 1.25) + (2 << 20))))

    out2d = pl.pallas_call(
        pwffn_kernel,
        out_shape=jax.ShapeDtypeStruct((rows_p, Dp), out_dtype),
        grid_spec=pltpu.PrefetchScalarGridSpec(
            num_scalar_prefetch=0,
            grid=grid,
            in_specs=[
                pl.BlockSpec((TM, Dp), lambda i, t: (i, 0)),   # x row tile
                pl.BlockSpec((Dp, TF), lambda i, t: (0, t)),   # W1 column slab
                pl.BlockSpec((1, TF), lambda i, t: (0, t)),    # b1 slice
                pl.BlockSpec((TF, Dp), lambda i, t: (t, 0)),   # W2 row slab
                pl.BlockSpec((1, Dp), lambda i, t: (0, 0)),    # b2 (full)
            ],
            out_specs=pl.BlockSpec((TM, Dp), lambda i, t: (i, 0)),
            scratch_shapes=[pltpu.VMEM((TM, Dp), jnp.float32)],
        ),
        compiler_params=pltpu.CompilerParams(
            dimension_semantics=("parallel", "arbitrary"),
            vmem_limit_bytes=vmem_limit),
        cost_estimate=cost,
    )(x2d, w1p, b1p, w2p, b2p)

    return out2d[:rows, :d_model].reshape(B, S, d_model)


def init_params(key, d_model, d_ff, dtype=jnp.float32):
    # Deterministic init mimicking nn.Linear default (uniform +-1/sqrt(fan_in)).
    k1, k2, k3, k4 = jax.random.split(key, 4)
    bound1 = 1.0 / (d_model ** 0.5)
    bound2 = 1.0 / (d_ff ** 0.5)
    w1 = jax.random.uniform(k1, (d_model, d_ff), dtype, -bound1, bound1)
    b1 = jax.random.uniform(k2, (1, d_ff), dtype, -bound1, bound1)
    w2 = jax.random.uniform(k3, (d_ff, d_model), dtype, -bound2, bound2)
    b2 = jax.random.uniform(k4, (1, d_model), dtype, -bound2, bound2)
    return w1, b1, w2, b2


if __name__ == "__main__":
    key = jax.random.PRNGKey(0)
    kx, kp = jax.random.split(key)

    batch, seq, d_model, d_ff = 2, 8, 32, 64
    x = jax.random.normal(kx, (batch, seq, d_model), jnp.float32)
    w1, b1, w2, b2 = init_params(kp, d_model, d_ff)

    # Reference in plain JAX (eval-mode dropout == identity).
    ref = jnp.maximum(x @ w1 + b1[0], 0.0) @ w2 + b2[0]

    # f32 compute path: tight numerical check.
    prepared, cfg = pwffn_prepare(w1, b1, w2, b2)
    out = jax.block_until_ready(pwffn(x, prepared, cfg))
    assert out.shape == (batch, seq, d_model)
    assert jnp.allclose(out, ref, atol=1e-5, rtol=1e-5)

    # bf16 compute path (recommended on TPU; bf16 MXU operands, f32 accumulation):
    # loose check against the f32 reference (standard mixed-precision deviation).
    prepared_bf16, cfg_bf16 = pwffn_prepare(w1, b1, w2, b2, compute_dtype=jnp.bfloat16)
    out_bf16 = jax.block_until_ready(pwffn(x, prepared_bf16, cfg_bf16))
    assert jnp.allclose(out_bf16.astype(jnp.float32), ref, atol=1e-1, rtol=1e-1)

    print("KERNEL_OK")
</pallas_src>

<mosaic_0001>
module attributes {stable_mosaic.version = 11 : i64} {
  func.func @pwffn_kernel(%arg0: i32, %arg1: i32, %arg2: memref<16x128xf32, #tpu.memory_space<vmem>>, %arg3: memref<128x128xf32, #tpu.memory_space<vmem>>, %arg4: memref<1x128xf32, #tpu.memory_space<vmem>>, %arg5: memref<128x128xf32, #tpu.memory_space<vmem>>, %arg6: memref<1x128xf32, #tpu.memory_space<vmem>>, %arg7: memref<16x128xf32, #tpu.memory_space<vmem>>, %arg8: memref<16x128xf32, #tpu.memory_space<vmem>>) attributes {dimension_semantics = [#tpu.dimension_semantics<parallel>, #tpu.dimension_semantics<arbitrary>], iteration_bounds = array<i64: 1, 1>, scalar_prefetch = 0 : i64, scratch_operands = 1 : i64, tpu.core_type = #tpu.core_type<tc>, window_params = [{transform_indices = @transform_0, window_bounds = array<i64: 16, 128>}, {transform_indices = @transform_1, window_bounds = array<i64: 128, 128>}, {transform_indices = @transform_2, window_bounds = array<i64: 1, 128>}, {transform_indices = @transform_3, window_bounds = array<i64: 128, 128>}, {pipeline_mode = #tpu.pipeline_mode<synchronous>, transform_indices = @transform_4, window_bounds = array<i64: 1, 128>}, {transform_indices = @transform_5, window_bounds = array<i64: 16, 128>}]} {
    %c0_i32 = arith.constant 0 : i32
    %0 = arith.cmpi eq, %arg1, %c0_i32 : i32
    %1 = arith.extui %0 : i1 to i32
    %c0_i32_0 = arith.constant 0 : i32
    %2 = arith.cmpi ne, %1, %c0_i32_0 : i32
    scf.if %2 {
      %c0_16 = arith.constant 0 : index
      %c0_17 = arith.constant 0 : index
      %19 = vector.load %arg6[%c0_16, %c0_17] : memref<1x128xf32, #tpu.memory_space<vmem>>, vector<1x128xf32>
      %20 = vector.shape_cast %19 : vector<1x128xf32> to vector<1x128xf32>
      %21 = vector.broadcast %20 : vector<1x128xf32> to vector<16x128xf32>
      %c0_18 = arith.constant 0 : index
      %c0_19 = arith.constant 0 : index
      %22 = vector.load %arg8[%c0_18, %c0_19] : memref<16x128xf32, #tpu.memory_space<vmem>>, vector<16x128xf32>
      tpu.vector_store %arg8[%c0_18, %c0_19], %21 {strides = array<i32>} : memref<16x128xf32, #tpu.memory_space<vmem>>, vector<16x128xf32>,
    } else {
    }
    %c0 = arith.constant 0 : index
    %c0_1 = arith.constant 0 : index
    %3 = vector.load %arg2[%c0, %c0_1] : memref<16x128xf32, #tpu.memory_space<vmem>>, vector<16x128xf32>
    %c0_2 = arith.constant 0 : index
    %c0_3 = arith.constant 0 : index
    %4 = vector.load %arg3[%c0_2, %c0_3] : memref<128x128xf32, #tpu.memory_space<vmem>>, vector<128x128xf32>
    %cst = arith.constant dense<0.000000e+00> : vector<16x128xf32>
    %5 = tpu.matmul %3, %4, %cst {dimension_numbers = #tpu.dot_dimension_numbers<[1], [0], [0], [1], [0, 0, 1, 1], [], []>} : vector<16x128xf32>, vector<128x128xf32>, vector<16x128xf32> -> vector<16x128xf32>
    %c0_4 = arith.constant 0 : index
    %c0_5 = arith.constant 0 : index
    %6 = vector.load %arg4[%c0_4, %c0_5] : memref<1x128xf32, #tpu.memory_space<vmem>>, vector<1x128xf32>
    %7 = vector.broadcast %6 : vector<1x128xf32> to vector<16x128xf32>
    %8 = arith.addf %5, %7 : vector<16x128xf32>
    %cst_6 = arith.constant 0.000000e+00 : f32
    %9 = vector.broadcast %cst_6 : f32 to vector<16x128xf32>
    %10 = arith.maximumf %8, %9 : vector<16x128xf32>
    %c0_7 = arith.constant 0 : index
    %c0_8 = arith.constant 0 : index
    %11 = vector.load %arg8[%c0_7, %c0_8] : memref<16x128xf32, #tpu.memory_space<vmem>>, vector<16x128xf32>
    %c0_9 = arith.constant 0 : index
    %c0_10 = arith.constant 0 : index
    %12 = vector.load %arg5[%c0_9, %c0_10] : memref<128x128xf32, #tpu.memory_space<vmem>>, vector<128x128xf32>
    %cst_11 = arith.constant dense<0.000000e+00> : vector<16x128xf32>
    %13 = tpu.matmul %10, %12, %cst_11 {dimension_numbers = #tpu.dot_dimension_numbers<[1], [0], [0], [1], [0, 0, 1, 1], [], []>} : vector<16x128xf32>, vector<128x128xf32>, vector<16x128xf32> -> vector<16x128xf32>
    %14 = arith.addf %11, %13 : vector<16x128xf32>
    %c0_12 = arith.constant 0 : index
    %c0_13 = arith.constant 0 : index
    %15 = vector.load %arg8[%c0_12, %c0_13] : memref<16x128xf32, #tpu.memory_space<vmem>>, vector<16x128xf32>
    tpu.vector_store %arg8[%c0_12, %c0_13], %14 {strides = array<i32>} : memref<16x128xf32, #tpu.memory_space<vmem>>, vector<16x128xf32>,
    %c0_i32_14 = arith.constant 0 : i32
    %16 = arith.cmpi eq, %arg1, %c0_i32_14 : i32
    %17 = arith.extui %16 : i1 to i32
    %c0_i32_15 = arith.constant 0 : i32
    %18 = arith.cmpi ne, %17, %c0_i32_15 : i32
    scf.if %18 {
      %c0_16 = arith.constant 0 : index
      %c0_17 = arith.constant 0 : index
      %19 = vector.load %arg8[%c0_16, %c0_17] : memref<16x128xf32, #tpu.memory_space<vmem>>, vector<16x128xf32>
      %c0_18 = arith.constant 0 : index
      %c0_19 = arith.constant 0 : index
      %20 = vector.load %arg7[%c0_18, %c0_19] : memref<16x128xf32, #tpu.memory_space<vmem>>, vector<16x128xf32>
      tpu.vector_store %arg7[%c0_18, %c0_19], %19 {strides = array<i32>} : memref<16x128xf32, #tpu.memory_space<vmem>>, vector<16x128xf32>,
    } else {
    }
    return
  }
  func.func @transform_0(%arg0: i32, %arg1: i32) -> (i32, i32) {
    %c0_i32 = arith.constant 0 : i32
    %c0_i32_0 = arith.constant 0 : i32
    return %arg0, %c0_i32 : i32, i32
  }
  func.func @transform_1(%arg0: i32, %arg1: i32) -> (i32, i32) {
    %c0_i32 = arith.constant 0 : i32
    %c0_i32_0 = arith.constant 0 : i32
    return %c0_i32, %arg1 : i32, i32
  }
  func.func @transform_2(%arg0: i32, %arg1: i32) -> (i32, i32) {
    %c0_i32 = arith.constant 0 : i32
    %c0_i32_0 = arith.constant 0 : i32
    return %c0_i32, %arg1 : i32, i32
  }
  func.func @transform_3(%arg0: i32, %arg1: i32) -> (i32, i32) {
    %c0_i32 = arith.constant 0 : i32
    %c0_i32_0 = arith.constant 0 : i32
    return %arg1, %c0_i32 : i32, i32
  }
  func.func @transform_4(%arg0: i32, %arg1: i32) -> (i32, i32) {
    %c0_i32 = arith.constant 0 : i32
    %c0_i32_0 = arith.constant 0 : i32
    %c0_i32_1 = arith.constant 0 : i32
    return %c0_i32, %c0_i32_0 : i32, i32
  }
  func.func @transform_5(%arg0: i32, %arg1: i32) -> (i32, i32) {
    %c0_i32 = arith.constant 0 : i32
    %c0_i32_0 = arith.constant 0 : i32
    return %arg0, %c0_i32 : i32, i32
  }
}

</mosaic_0001>

<bundles_post_ra>
// kernel: tpu_custom_call.1
= control target key start
LH: loop header
LB: loop body
LE: loop exit
PB: predicated region body
PF: predicated region fallthrough
CT: control target
= control target key end

     0   :  { %10 = vsyncpa [#allocation4], 0  ;;  %s565_s0 = inlined_call_operand.hbm [shape: f32[16,128], index: 0, kind: input, shape index: {}]   ;;  %s566_s1 = inlined_call_operand.hbm [shape: f32[128,128], index: 1, kind: input, shape index: {}]   ;;  %s567_s2 = inlined_call_operand.vmem [shape: f32[1,128], index: 2, kind: input, shape index: {}]   ;;  %s568_s3 = inlined_call_operand.hbm [shape: f32[128,128], index: 3, kind: input, shape index: {}]   ;;  %s569_s4 = inlined_call_operand.vmem [shape: f32[1,128], index: 4, kind: input, shape index: {}]   ;;  %s570_s5 = inlined_call_operand.hbm [shape: f32[16,128], index: 5, kind: output, shape index: {}]  }
   0x1   :  { %11 = vsyncpa [#allocation7], 0 }
   0x2   :  { %12 = vsyncpa [#allocation5], 0  ;;  %s499_s18 = smov [#allocation6]   ;;  %s500_s20 = smov [#allocation3]  }
   0x3   :  { %s30_s19 = sshll.u32 %s499_s18, 4  ;;  %s18_s21 = sshll.u32 %s500_s20, 4  ;;  %s31_s19 = int_to_ptr.vmem [resolvable:$true] %s30_s19  ;;  %s19_s21 = int_to_ptr.vmem [resolvable:$true] %s18_s21 }
   0x4   :  { %s421_s22 = scalar_lea.vmem %s31_s19, 2048  ;;  %p426_p1 = scmp.lt.s32.totalorder %s31_s19, %s31_s19 }
   0x5   :  { %p422_p0 = scmp.ne.s32.totalorder %s31_s19, %s421_s22  ;;  %p427_p2 = scmp.lt.s32.totalorder %s421_s22, %s421_s22 }
   0x7   :  { %p428_p3 = por %p427_p2, %p426_p1 }
   0x9   :  { %p429_p4 = pnand %p428_p3, %p422_p0 }
   0xb   :  { %432 = shalt.err (!%p429_p4)
}
   0xc   :  { %s501_s23 = smov 128   ;;  %s502_s24 = smov 8  }
   0xd   :  { %36 = dma.hbm_to_vmem [thread:$0]  %s566_s1, 2048, %s31_s19, [#allocation7], %s501_s23, %s501_s23, %s502_s24  }
   0xe   :  { %s441_s27 = scalar_lea.vmem %s19_s21, 256  ;;  %p446_p6 = scmp.lt.s32.totalorder %s19_s21, %s19_s21 }
   0xf   :  { %p442_p5 = scmp.ne.s32.totalorder %s19_s21, %s441_s27  ;;  %p447_p7 = scmp.lt.s32.totalorder %s441_s27, %s441_s27 }
  0x11   :  { %p448_p8 = por %p447_p7, %p446_p6 }
  0x13   :  { %p449_p9 = pnand %p448_p8, %p442_p5 }
  0x15   :  { %452 = shalt.err (!%p449_p9)
}
  0x16   :  { %24 = dma.hbm_to_vmem [thread:$0]  %s565_s0, 256, %s19_s21, [#allocation4], %s501_s23, %s501_s23, %s502_s24  }
  0x17   :  { %s503_s30 = smov [#allocation8]  }
  0x18   :  { %s44_s6 = sshll.u32 %s503_s30, 4  ;;  %s45_s6 = int_to_ptr.vmem [resolvable:$true] %s44_s6 }
  0x19   :  { %s461_s7 = scalar_lea.vmem %s45_s6, 2048  ;;  %p466_p11 = scmp.lt.s32.totalorder %s45_s6, %s45_s6 }
  0x1a   :  { %p462_p10 = scmp.ne.s32.totalorder %s45_s6, %s461_s7  ;;  %p467_p12 = scmp.lt.s32.totalorder %s461_s7, %s461_s7 }
  0x1c   :  { %p468_p13 = por %p467_p12, %p466_p11 }
  0x1e   :  { %p469_p0 = pnand %p468_p13, %p462_p10 }
  0x20   :  { %472 = shalt.err (!%p469_p0)
}
  0x21   :  { %50 = dma.hbm_to_vmem [thread:$0]  %s568_s3, 2048, %s45_s6, [#allocation7], %s501_s23, %s501_s23, %s502_s24  }
  0x22   :  { %493 = dma.done.wait [#allocation4], 256  }
  0x23   :  { %494 = vsyncadd [#allocation4], 4294967040 }
  0x24   :  { %495 = dma.done.wait [#allocation7], 4096  }
  0x25   :  { %496 = vsyncadd [#allocation7], 4294963200  ;;  %v92_v0 = vld [vmem:[#allocation6 + $0x78] sm:$0xff]  ;;  %v91_v1 = vld [vmem:[#allocation6 + $0x70] sm:$0xff]  ;;  %s504_s11 = smov [#allocation9]  }
  0x26   :  { %337 = vmatprep.subr.mxu0 %v92_v0  ;;  %v90_v2 = vld [vmem:[#allocation6 + $0x68] sm:$0xff]  ;;  %v89_v3 = vld [vmem:[#allocation6 + $0x60] sm:$0xff]  ;;  %v75_v4 = vld [vmem:[#allocation3] sm:$0xff]  ;;  %s286_s12 = sshll.u32 %s504_s11, 4  ;;  %s287_s12 = int_to_ptr.vmem [resolvable:$true] %s286_s12 }
  0x27   :  { %338 = vmatpush3.msra.mxu0 %v92_v0  ;;  %v88_v5 = vld [vmem:[#allocation6 + $0x58] sm:$0xff]  ;;  %369 = vmatprep.mubr.f32.mxu0 %v75_v4  ;;  %v193_v7 = vld [vmem:[#allocation8 + $0x70] sm:$0xff]  ;;  %v192_v9 = vld [vmem:[#allocation8 + $0x68] sm:$0xff]  ;;  %p478_p2 = scmp.lt.s32.totalorder %s287_s12, %s287_s12 }
  0x28   :  { %339 = vmatprep.subr.mxu0 %v91_v1  ;;  %v194_v6 = vld [vmem:[#allocation8 + $0x78] sm:$0xff]  ;;  %v87_v8 = vld [vmem:[#allocation6 + $0x50] sm:$0xff]  ;;  %v86_v10 = vld [vmem:[#allocation6 + $0x48] sm:$0xff] }
  0x29   :  { %340 = vmatpush3.msra.mxu0 %v91_v1  ;;  %372 = vmatprep.subr.mxu1 %v194_v6  ;;  %v191_v11 = vld [vmem:[#allocation8 + $0x60] sm:$0xff]  ;;  %v190_v13 = vld [vmem:[#allocation8 + $0x58] sm:$0xff]  ;;  %v189_v15 = vld [vmem:[#allocation8 + $0x50] sm:$0xff] }
  0x2a   :  { %341 = vmatprep.subr.mxu0 %v90_v2  ;;  %373 = vmatpush3.msra.mxu1 %v194_v6  ;;  %v85_v12 = vld [vmem:[#allocation6 + $0x40] sm:$0xff]  ;;  %v84_v14 = vld [vmem:[#allocation6 + $0x38] sm:$0xff]  ;;  %v83_v16 = vld [vmem:[#allocation6 + $0x30] sm:$0xff] }
  0x2b   :  { %342 = vmatpush3.msra.mxu0 %v90_v2  ;;  %374 = vmatprep.subr.mxu1 %v193_v7  ;;  %v188_v17 = vld [vmem:[#allocation8 + $0x48] sm:$0xff]  ;;  %v187_v19 = vld [vmem:[#allocation8 + $0x40] sm:$0xff]  ;;  %v186_v21 = vld [vmem:[#allocation8 + $0x38] sm:$0xff] }
  0x2c   :  { %343 = vmatprep.subr.mxu0 %v89_v3  ;;  %375 = vmatpush3.msra.mxu1 %v193_v7  ;;  %v82_v18 = vld [vmem:[#allocation6 + $0x28] sm:$0xff]  ;;  %v81_v20 = vld [vmem:[#allocation6 + $0x20] sm:$0xff]  ;;  %v80_v22 = vld [vmem:[#allocation6 + $0x18] sm:$0xff] }
  0x2d   :  { %344 = vmatpush3.msra.mxu0 %v89_v3  ;;  %376 = vmatprep.subr.mxu1 %v192_v9  ;;  %v185_v23 = vld [vmem:[#allocation8 + $0x30] sm:$0xff]  ;;  %v184_v25 = vld [vmem:[#allocation8 + $0x28] sm:$0xff]  ;;  %v183_v27 = vld [vmem:[#allocation8 + $0x20] sm:$0xff] }
  0x2e   :  { %345 = vmatprep.subr.mxu0 %v88_v5  ;;  %377 = vmatpush3.msra.mxu1 %v192_v9  ;;  %v79_v24 = vld [vmem:[#allocation6 + $0x10] sm:$0xff]  ;;  %v78_v26 = vld [vmem:[#allocation6 + $0x8] sm:$0xff]  ;;  %v77_v28 = vld [vmem:[#allocation6] sm:$0xff] }
  0x2f   :  { %346 = vmatpush3.msra.mxu0 %v88_v5  ;;  %378 = vmatprep.subr.mxu1 %v191_v11  ;;  %v76_v29 = vld [vmem:[#allocation3 + $0x8] sm:$0xff]  ;;  %v181_v31 = vld [vmem:[#allocation8 + $0x10] sm:$0xff]  ;;  %v180_v32 = vld [vmem:[#allocation8 + $0x8] sm:$0xff] }
  0x30   :  { %347 = vmatprep.subr.mxu0 %v87_v8  ;;  %379 = vmatpush3.msra.mxu1 %v191_v11  ;;  %v182_v30 = vld [vmem:[#allocation8 + $0x18] sm:$0xff]  ;;  %v179_v33 = vld [vmem:[#allocation8] sm:$0xff]  ;;  %v300_v34 = vld [vmem:[%s567_s2] ss:$0 sm:$0xff]  ;;  %s473_s2 = scalar_lea.vmem %s287_s12, 256 }
  0x31   :  { %348 = vmatpush3.msra.mxu0 %v87_v8  ;;  %380 = vmatprep.subr.mxu1 %v190_v13  ;;  %v299_v41 = vld [vmem:[%s569_s4] ss:$0 sm:$0xff]  ;;  %p474_p1 = scmp.ne.s32.totalorder %s287_s12, %s473_s2  ;;  %p479_p3 = scmp.lt.s32.totalorder %s473_s2, %s473_s2 }
  0x32   :  { %349 = vmatprep.subr.mxu0 %v86_v10  ;;  %381 = vmatpush3.msra.mxu1 %v190_v13 }
  0x33   :  { %350 = vmatpush3.msra.mxu0 %v86_v10  ;;  %382 = vmatprep.subr.mxu1 %v189_v15  ;;  %p480_p4 = por %p479_p3, %p478_p2 }
  0x34   :  { %351 = vmatprep.subr.mxu0 %v85_v12  ;;  %383 = vmatpush3.msra.mxu1 %v189_v15 }
  0x35   :  { %352 = vmatpush3.msra.mxu0 %v85_v12  ;;  %384 = vmatprep.subr.mxu1 %v188_v17  ;;  %p481_p5 = pnand %p480_p4, %p474_p1 }
  0x36   :  { %353 = vmatprep.subr.mxu0 %v84_v14  ;;  %385 = vmatpush3.msra.mxu1 %v188_v17 }
  0x37   :  { %354 = vmatpush3.msra.mxu0 %v84_v14  ;;  %386 = vmatprep.subr.mxu1 %v187_v19 }
  0x38   :  { %355 = vmatprep.subr.mxu0 %v83_v16  ;;  %387 = vmatpush3.msra.mxu1 %v187_v19 }
  0x39   :  { %356 = vmatpush3.msra.mxu0 %v83_v16  ;;  %388 = vmatprep.subr.mxu1 %v186_v21 }
  0x3a   :  { %357 = vmatprep.subr.mxu0 %v82_v18  ;;  %389 = vmatpush3.msra.mxu1 %v186_v21 }
  0x3b   :  { %358 = vmatpush3.msra.mxu0 %v82_v18  ;;  %390 = vmatprep.subr.mxu1 %v185_v23 }
  0x3c   :  { %359 = vmatprep.subr.mxu0 %v81_v20  ;;  %391 = vmatpush3.msra.mxu1 %v185_v23 }
  0x3d   :  { %360 = vmatpush3.msra.mxu0 %v81_v20  ;;  %392 = vmatprep.subr.mxu1 %v184_v25 }
  0x3e   :  { %361 = vmatprep.subr.mxu0 %v80_v22  ;;  %393 = vmatpush3.msra.mxu1 %v184_v25 }
  0x3f   :  { %362 = vmatpush3.msra.mxu0 %v80_v22  ;;  %394 = vmatprep.subr.mxu1 %v183_v27 }
  0x40   :  { %363 = vmatprep.subr.mxu0 %v79_v24  ;;  %395 = vmatpush3.msra.mxu1 %v183_v27 }
  0x41   :  { %364 = vmatpush3.msra.mxu0 %v79_v24  ;;  %396 = vmatprep.subr.mxu1 %v182_v30 }
  0x42   :  { %365 = vmatprep.subr.mxu0 %v78_v26  ;;  %397 = vmatpush3.msra.mxu1 %v182_v30 }
  0x43   :  { %366 = vmatpush3.msra.mxu0 %v78_v26  ;;  %398 = vmatprep.subr.mxu1 %v181_v31 }
  0x44   :  { %367 = vmatprep.subr.mxu0 %v77_v28  ;;  %399 = vmatpush3.msra.mxu1 %v181_v31 }
  0x45   :  { %368 = vmatpush3.msra.mxu0 %v77_v28  ;;  %400 = vmatprep.subr.mxu1 %v180_v32 }
  0x46   :  { %370 = vmatmul.mubr.f32.vlgmr.msra.gmra.mxu0 %v76_v29  ;;  %401 = vmatpush3.msra.mxu1 %v180_v32 }
  0x47   :  { %402 = vmatprep.subr.mxu1 %v179_v33 }
  0x48   :  { %403 = vmatpush3.msra.mxu1 %v179_v33 }
 0x106   :  { %v371_v35 = vpop.f32.mrf.mxu0 }
 0x107   :  { %v172_v36 = vadd.f32 %v371_v35, %v300_v34 }
 0x108   :  { %v166_v37 = vpop.f32.mrf.mxu0 }
 0x109   :  { %v167_v38 = vadd.f32 %v300_v34, %v166_v37  ;;  %v176_v40 = vmax.f32 %v172_v36, 0.0 }
 0x10b   :  { %v175_v39 = vmax.f32 %v167_v38, 0.0 }
 0x10d   :  { %404 = vmatprep.mubr.f32.mxu1 %v175_v39 }
 0x10e   :  { %405 = vmatmul.mubr.f32.vlgmr.msra.gmra.mxu1 %v176_v40 }
 0x1ce   :  { %v406_v42 = vpop.f32.mrf.mxu1 }
 0x1cf   :  { %v271_v43 = vadd.f32 %v406_v42, %v299_v41 }
 0x1d0   :  { %v261_v44 = vpop.f32.mrf.mxu1 }
 0x1d1   :  { %280 = vst [vmem:[#allocation9 + $0x8] sm:$0xff] %v271_v43  ;;  %v270_v45 = vadd.f32 %v299_v41, %v261_v44 }
 0x1d3   :  { %279 = vst [vmem:[#allocation9] sm:$0xff] %v270_v45 }
 0x1d4   :  { %484 = shalt.err (!%p481_p5)
}
 0x1d5   :  { %292 = dma.vmem_to_hbm [thread:$0]  %s287_s12, 256, %s570_s5, [#allocation5], %s501_s23, %s501_s23, %s502_s24  }
 0x1d6   :  { %497 = dma.done.wait [#allocation5], 256  }
 0x1d7   :  { %498 = vsyncadd [#allocation5], 4294967040 }
 0x1d8   :  { %296 = vsyncpa [#allocation4], 1 }
 0x1d9   :  { %297 = vsyncpa [#allocation7], 1 }
 0x1da   :  { %298 = vsyncpa [#allocation5], 1 }

</bundles_post_ra>
